<compile_context>
chip_gen: v7x
topology: tpu7x:2x2x1
jax: 0.10.0
libtpu: 0.0.40
codegen_flags: <defaults>
</compile_context>

<pallas_src>
import functools

import jax
import jax.numpy as jnp
from jax.experimental import pallas as pl
from jax.experimental.pallas import tpu as pltpu

_SMOOTH = 1e-5
_LANES = 128


def _round_up(x, m):
    return -(-x // m) * m


def _in_block_bytes(bc, cols, dtype):
    """VMEM bytes of a (bc, cols) block, accounting for sublane padding."""
    itemsize = jnp.dtype(dtype).itemsize
    sublanes = max(8, 32 // itemsize)          # f32: 8, bf16: 16, int8: 32
    return _round_up(bc, sublanes) * cols * itemsize


def _choose_col_tile(bc, hw, pred_dtype, tgt_dtype,
                     combined_block_bytes=8 * 1024 * 1024):
    """Lane-aligned spatial tile: ~8 MiB combined (both inputs) per step."""
    per_col = (_in_block_bytes(bc, 1, pred_dtype)
               + _in_block_bytes(bc, 1, tgt_dtype))
    max_cols = max(_LANES,
                   (combined_block_bytes // per_col) // _LANES * _LANES)
    return int(min(_round_up(hw, _LANES), max_cols))


def _dice_sums_kernel(pred_ref, tgt_ref, inter_ref, psum_ref, tsum_ref, *,
                      hw, col_tile, steps_per_part, full_blocks, has_tail,
                      needs_guard):
    """Accumulate per-(b,c)-row sums of pred*tgt, pred, tgt over spatial blocks."""
    part = pl.program_id(0)
    s = pl.program_id(1)
    g = part * steps_per_part + s   # global spatial block index

    @pl.when(s == 0)
    def _init():
        inter_ref[...] = jnp.zeros_like(inter_ref)
        psum_ref[...] = jnp.zeros_like(psum_ref)
        tsum_ref[...] = jnp.zeros_like(tsum_ref)

    def accumulate(mask_tail):
        # clamp pred (target is NOT clamped, matching the PyTorch module)
        p = jnp.clip(pred_ref[...].astype(jnp.float32), _SMOOTH, 1.0 - _SMOOTH)
        t = tgt_ref[...].astype(jnp.float32)
        if mask_tail:
            # Zero garbage past the true spatial extent BEFORE multiply/sums.
            col = g * col_tile + jax.lax.broadcasted_iota(jnp.int32, p.shape, 1)
            valid = col < hw
            p = jnp.where(valid, p, 0.0)
            t = jnp.where(valid, t, 0.0)
        inter_ref[...] += jnp.sum(p * t, axis=-1, keepdims=True)
        psum_ref[...] += jnp.sum(p, axis=-1, keepdims=True)
        tsum_ref[...] += jnp.sum(t, axis=-1, keepdims=True)

    # Unmasked body for full blocks; masked body ONLY for the single tail block.
    if full_blocks > 0:
        if has_tail or needs_guard:
            pl.when(g < full_blocks)(lambda: accumulate(False))
        else:
            accumulate(False)
    if has_tail:
        pl.when(g == full_blocks)(lambda: accumulate(True))


def dice_loss(inputs, target, n_classes=None, weight=None, smooth=_SMOOTH,
              col_tile=None, n_parallel=2):
    """inputs, target: [B, C, H, W]. Returns scalar f32 loss (training path)."""
    assert inputs.shape == target.shape, "predict & target shape do not match"
    b, c, h, w = inputs.shape
    n_classes = c if n_classes is None else n_classes
    assert n_classes == c
    bc, hw = b * c, h * w

    # Free reshapes of contiguous NCHW; dtype cast happens in-kernel.
    pred2d = inputs.reshape(bc, hw)
    tgt2d = target.reshape(bc, hw)

    if col_tile is None:
        col_tile = _choose_col_tile(bc, hw, pred2d.dtype, tgt2d.dtype)

    full_blocks = hw // col_tile
    has_tail = (hw % col_tile) != 0
    total_blocks = full_blocks + (1 if has_tail else 0)

    # Leading parallel axis: megacore shards halves across v7x's 2 TensorCores.
    n_par = max(1, min(int(n_parallel), total_blocks))
    steps_per_part = -(-total_blocks // n_par)
    needs_guard = n_par * steps_per_part != total_blocks
    grid = (n_par, steps_per_part)
    last_block = total_blocks - 1

    if needs_guard:
        def in_map(p, s):
            return (0, jnp.minimum(p * steps_per_part + s, last_block))
    else:
        def in_map(p, s):
            return (0, p * steps_per_part + s)

    in_blk = pl.BlockSpec((bc, col_tile), in_map)
    out_blk = pl.BlockSpec((None, bc, 1), lambda p, s: (p, 0, 0))
    row_out = jax.ShapeDtypeStruct((n_par, bc, 1), jnp.float32)

    # Explicit VMEM budget: 2 inputs x 2 pipeline buffers (sublane-padded) +
    # resident outputs + margin. Stays well under v7x's 64 MiB physical VMEM
    # and overrides v5e's 16 MiB default scoped limit.
    in_bytes = (_in_block_bytes(bc, col_tile, pred2d.dtype)
                + _in_block_bytes(bc, col_tile, tgt2d.dtype))
    out_bytes = 3 * 2 * _round_up(bc, 8) * _LANES * 4
    vmem_limit = 2 * in_bytes + out_bytes + (4 << 20)
    vmem_limit = int(min(max(vmem_limit, 16 << 20), 64 << 20))

    kernel = functools.partial(
        _dice_sums_kernel, hw=hw, col_tile=col_tile,
        steps_per_part=steps_per_part, full_blocks=full_blocks,
        has_tail=has_tail, needs_guard=needs_guard)

    inter, psum, tsum = pl.pallas_call(
        kernel,
        out_shape=(row_out, row_out, row_out),
        grid_spec=pltpu.PrefetchScalarGridSpec(
            num_scalar_prefetch=0,
            grid=grid,
            in_specs=[in_blk, in_blk],
            out_specs=[out_blk, out_blk, out_blk],
        ),
        compiler_params=pltpu.CompilerParams(
            dimension_semantics=("parallel", "arbitrary"),
            vmem_limit_bytes=vmem_limit),
    )(pred2d, tgt2d)

    # Combine the per-core partials + per-class dice formula: O(B*C) scalars.
    inter_c = inter.reshape(n_par, b, c).sum(axis=(0, 1))
    psum_c = psum.reshape(n_par, b, c).sum(axis=(0, 1))
    tsum_c = tsum.reshape(n_par, b, c).sum(axis=(0, 1))
    dice = 2.0 * (inter_c + smooth) / (psum_c + tsum_c + smooth)
    cls_loss = 1.0 - dice
    wvec = (jnp.ones((c,), jnp.float32) if weight is None
            else jnp.asarray(weight, jnp.float32))
    return (jnp.sum(cls_loss * wvec) / n_classes).astype(jnp.float32)


def _reference(inputs, target, n_classes, weight=None, smooth=_SMOOTH):
    """Pure-JAX mirror of the PyTorch DiceLoss.forward (training=True path)."""
    weight = [1.0] * n_classes if weight is None else weight
    loss = 0.0
    for i in range(n_classes):
        pred = jnp.clip(inputs[:, i].astype(jnp.float32), smooth, 1.0 - smooth)
        tgt = target[:, i].astype(jnp.float32)
        intersection = jnp.sum(pred * tgt)
        union = jnp.sum(pred) + jnp.sum(tgt)
        dice = 2.0 * (intersection + smooth) / (union + smooth)
        loss += (1.0 - dice) * weight[i]
    return loss / n_classes


if __name__ == "__main__":
    key = jax.random.PRNGKey(0)
    k1, k2, k3, k4 = jax.random.split(key, 4)

    # Case 1: single full-block path (H*W multiple of 128).
    B, C, H, W = 2, 5, 16, 16
    inputs = jax.random.uniform(k1, (B, C, H, W), dtype=jnp.float32)   # probs
    target = (jax.random.uniform(k2, (B, C, H, W)) > 0.5).astype(jnp.float32)
    loss = jax.block_until_ready(dice_loss(inputs, target, n_classes=C))
    ref = jax.block_until_ready(_reference(inputs, target, C))
    assert jnp.allclose(loss, ref, rtol=1e-5, atol=1e-5), (loss, ref)

    # Case 2: default tiling with hw % 128 != 0 (single ragged tail block).
    B2, C2, H2, W2 = 2, 3, 20, 20    # H*W = 400 -> one 512-wide masked block
    inputs2 = jax.random.uniform(k3, (B2, C2, H2, W2), dtype=jnp.float32)
    target2 = (jax.random.uniform(k4, (B2, C2, H2, W2)) > 0.5).astype(jnp.float32)
    loss2 = jax.block_until_ready(dice_loss(inputs2, target2, n_classes=C2))
    ref2 = jax.block_until_ready(_reference(inputs2, target2, C2))
    assert jnp.allclose(loss2, ref2, rtol=1e-5, atol=1e-5), (loss2, ref2)

    # Case 3: forced small tile -> multi-block grid, parallel split (2 parts),
    # padded grid guard and masked tail block all exercised.
    loss3 = jax.block_until_ready(
        dice_loss(inputs2, target2, n_classes=C2, col_tile=128))
    assert jnp.allclose(loss3, ref2, rtol=1e-5, atol=1e-5), (loss3, ref2)

    # Case 4: bf16 predictions (narrow-dtype call contract), f32 accumulation.
    loss4 = jax.block_until_ready(
        dice_loss(inputs.astype(jnp.bfloat16), target, n_classes=C))
    ref4 = jax.block_until_ready(
        _reference(inputs.astype(jnp.bfloat16), target, C))
    assert jnp.allclose(loss4, ref4, rtol=1e-5, atol=1e-5), (loss4, ref4)

    # Case 5: explicit class weights.
    wts = [0.5, 1.0, 2.0, 1.5, 0.25]
    loss5 = jax.block_until_ready(
        dice_loss(inputs, target, n_classes=C, weight=wts))
    ref5 = jax.block_until_ready(_reference(inputs, target, C, weight=wts))
    assert jnp.allclose(loss5, ref5, rtol=1e-5, atol=1e-5), (loss5, ref5)

    print("KERNEL_OK")
</pallas_src>

<mosaic_0001>
module attributes {stable_mosaic.version = 11 : i64} {
  func.func @_dice_sums_kernel(%arg0: i32, %arg1: i32, %arg2: memref<10x256xf32, #tpu.memory_space<vmem>>, %arg3: memref<10x256xf32, #tpu.memory_space<vmem>>, %arg4: memref<1x10x1xf32, #tpu.memory_space<vmem>>, %arg5: memref<1x10x1xf32, #tpu.memory_space<vmem>>, %arg6: memref<1x10x1xf32, #tpu.memory_space<vmem>>) attributes {dimension_semantics = [#tpu.dimension_semantics<parallel>, #tpu.dimension_semantics<arbitrary>], iteration_bounds = array<i64: 1, 1>, scalar_prefetch = 0 : i64, scratch_operands = 0 : i64, tpu.core_type = #tpu.core_type<tc>, window_params = [{transform_indices = @transform_0, window_bounds = array<i64: 10, 256>}, {transform_indices = @transform_1, window_bounds = array<i64: 10, 256>}, {transform_indices = @transform_2, window_bounds = array<i64: 1, 10, 1>}, {transform_indices = @transform_3, window_bounds = array<i64: 1, 10, 1>}, {transform_indices = @transform_4, window_bounds = array<i64: 1, 10, 1>}]} {
    %c0_i32 = arith.constant 0 : i32
    %0 = arith.cmpi eq, %arg1, %c0_i32 : i32
    %1 = arith.extui %0 : i1 to i32
    %c0_i32_0 = arith.constant 0 : i32
    %2 = arith.cmpi ne, %1, %c0_i32_0 : i32
    scf.if %2 {
      %cst_26 = arith.constant 0.000000e+00 : f32
      %34 = vector.broadcast %cst_26 : f32 to vector<10x1xf32>
      %c0_27 = arith.constant 0 : index
      %c0_28 = arith.constant 0 : index
      %c0_29 = arith.constant 0 : index
      %35 = vector.load %arg4[%c0_27, %c0_28, %c0_29] : memref<1x10x1xf32, #tpu.memory_space<vmem>>, vector<1x10x1xf32>
      %36 = vector.shape_cast %35 : vector<1x10x1xf32> to vector<10x1xf32>
      %37 = vector.shape_cast %34 : vector<10x1xf32> to vector<1x10x1xf32>
      tpu.vector_store %arg4[%c0_27, %c0_28, %c0_29], %37 {strides = array<i32>} : memref<1x10x1xf32, #tpu.memory_space<vmem>>, vector<1x10x1xf32>,
      %cst_30 = arith.constant 0.000000e+00 : f32
      %38 = vector.broadcast %cst_30 : f32 to vector<10x1xf32>
      %c0_31 = arith.constant 0 : index
      %c0_32 = arith.constant 0 : index
      %c0_33 = arith.constant 0 : index
      %39 = vector.load %arg5[%c0_31, %c0_32, %c0_33] : memref<1x10x1xf32, #tpu.memory_space<vmem>>, vector<1x10x1xf32>
      %40 = vector.shape_cast %39 : vector<1x10x1xf32> to vector<10x1xf32>
      %41 = vector.shape_cast %38 : vector<10x1xf32> to vector<1x10x1xf32>
      tpu.vector_store %arg5[%c0_31, %c0_32, %c0_33], %41 {strides = array<i32>} : memref<1x10x1xf32, #tpu.memory_space<vmem>>, vector<1x10x1xf32>,
      %cst_34 = arith.constant 0.000000e+00 : f32
      %42 = vector.broadcast %cst_34 : f32 to vector<10x1xf32>
      %c0_35 = arith.constant 0 : index
      %c0_36 = arith.constant 0 : index
      %c0_37 = arith.constant 0 : index
      %43 = vector.load %arg6[%c0_35, %c0_36, %c0_37] : memref<1x10x1xf32, #tpu.memory_space<vmem>>, vector<1x10x1xf32>
      %44 = vector.shape_cast %43 : vector<1x10x1xf32> to vector<10x1xf32>
      %45 = vector.shape_cast %42 : vector<10x1xf32> to vector<1x10x1xf32>
      tpu.vector_store %arg6[%c0_35, %c0_36, %c0_37], %45 {strides = array<i32>} : memref<1x10x1xf32, #tpu.memory_space<vmem>>, vector<1x10x1xf32>,
    } else {
    }
    %c0 = arith.constant 0 : index
    %c0_1 = arith.constant 0 : index
    %3 = vector.load %arg2[%c0, %c0_1] : memref<10x256xf32, #tpu.memory_space<vmem>>, vector<10x256xf32>
    %cst = arith.constant 9.99999974E-6 : f32
    %cst_2 = arith.constant 0.999989986 : f32
    %4 = vector.broadcast %cst : f32 to vector<10x256xf32>
    %5 = arith.maximumf %4, %3 : vector<10x256xf32>
    %6 = vector.broadcast %cst_2 : f32 to vector<10x256xf32>
    %7 = arith.minimumf %6, %5 : vector<10x256xf32>
    %c0_3 = arith.constant 0 : index
    %c0_4 = arith.constant 0 : index
    %8 = vector.load %arg3[%c0_3, %c0_4] : memref<10x256xf32, #tpu.memory_space<vmem>>, vector<10x256xf32>
    %c0_5 = arith.constant 0 : index
    %c0_6 = arith.constant 0 : index
    %c0_7 = arith.constant 0 : index
    %9 = vector.load %arg4[%c0_5, %c0_6, %c0_7] : memref<1x10x1xf32, #tpu.memory_space<vmem>>, vector<1x10x1xf32>
    %10 = vector.shape_cast %9 : vector<1x10x1xf32> to vector<10x1xf32>
    %11 = arith.mulf %7, %8 : vector<10x256xf32>
    %cst_8 = arith.constant dense<0.000000e+00> : vector<10xf32>
    %12 = vector.multi_reduction <add>, %11, %cst_8 [1] : vector<10x256xf32> to vector<10xf32>
    %13 = vector.shape_cast %12 : vector<10xf32> to vector<10x1xf32>
    %14 = arith.addf %10, %13 : vector<10x1xf32>
    %c0_9 = arith.constant 0 : index
    %c0_10 = arith.constant 0 : index
    %c0_11 = arith.constant 0 : index
    %15 = vector.load %arg4[%c0_9, %c0_10, %c0_11] : memref<1x10x1xf32, #tpu.memory_space<vmem>>, vector<1x10x1xf32>
    %16 = vector.shape_cast %15 : vector<1x10x1xf32> to vector<10x1xf32>
    %17 = vector.shape_cast %14 : vector<10x1xf32> to vector<1x10x1xf32>
    tpu.vector_store %arg4[%c0_9, %c0_10, %c0_11], %17 {strides = array<i32>} : memref<1x10x1xf32, #tpu.memory_space<vmem>>, vector<1x10x1xf32>,
    %c0_12 = arith.constant 0 : index
    %c0_13 = arith.constant 0 : index
    %c0_14 = arith.constant 0 : index
    %18 = vector.load %arg5[%c0_12, %c0_13, %c0_14] : memref<1x10x1xf32, #tpu.memory_space<vmem>>, vector<1x10x1xf32>
    %19 = vector.shape_cast %18 : vector<1x10x1xf32> to vector<10x1xf32>
    %cst_15 = arith.constant dense<0.000000e+00> : vector<10xf32>
    %20 = vector.multi_reduction <add>, %7, %cst_15 [1] : vector<10x256xf32> to vector<10xf32>
    %21 = vector.shape_cast %20 : vector<10xf32> to vector<10x1xf32>
    %22 = arith.addf %19, %21 : vector<10x1xf32>
    %c0_16 = arith.constant 0 : index
    %c0_17 = arith.constant 0 : index
    %c0_18 = arith.constant 0 : index
    %23 = vector.load %arg5[%c0_16, %c0_17, %c0_18] : memref<1x10x1xf32, #tpu.memory_space<vmem>>, vector<1x10x1xf32>
    %24 = vector.shape_cast %23 : vector<1x10x1xf32> to vector<10x1xf32>
    %25 = vector.shape_cast %22 : vector<10x1xf32> to vector<1x10x1xf32>
    tpu.vector_store %arg5[%c0_16, %c0_17, %c0_18], %25 {strides = array<i32>} : memref<1x10x1xf32, #tpu.memory_space<vmem>>, vector<1x10x1xf32>,
    %c0_19 = arith.constant 0 : index
    %c0_20 = arith.constant 0 : index
    %c0_21 = arith.constant 0 : index
    %26 = vector.load %arg6[%c0_19, %c0_20, %c0_21] : memref<1x10x1xf32, #tpu.memory_space<vmem>>, vector<1x10x1xf32>
    %27 = vector.shape_cast %26 : vector<1x10x1xf32> to vector<10x1xf32>
    %cst_22 = arith.constant dense<0.000000e+00> : vector<10xf32>
    %28 = vector.multi_reduction <add>, %8, %cst_22 [1] : vector<10x256xf32> to vector<10xf32>
    %29 = vector.shape_cast %28 : vector<10xf32> to vector<10x1xf32>
    %30 = arith.addf %27, %29 : vector<10x1xf32>
    %c0_23 = arith.constant 0 : index
    %c0_24 = arith.constant 0 : index
    %c0_25 = arith.constant 0 : index
    %31 = vector.load %arg6[%c0_23, %c0_24, %c0_25] : memref<1x10x1xf32, #tpu.memory_space<vmem>>, vector<1x10x1xf32>
    %32 = vector.shape_cast %31 : vector<1x10x1xf32> to vector<10x1xf32>
    %33 = vector.shape_cast %30 : vector<10x1xf32> to vector<1x10x1xf32>
    tpu.vector_store %arg6[%c0_23, %c0_24, %c0_25], %33 {strides = array<i32>} : memref<1x10x1xf32, #tpu.memory_space<vmem>>, vector<1x10x1xf32>,
    return
  }
  func.func @transform_0(%arg0: i32, %arg1: i32) -> (i32, i32) {
    %c1_i32 = arith.constant 1 : i32
    %0 = arith.muli %arg0, %c1_i32 : i32
    %1 = arith.addi %0, %arg1 : i32
    %c0_i32 = arith.constant 0 : i32
    %c0_i32_0 = arith.constant 0 : i32
    return %c0_i32, %1 : i32, i32
  }
  func.func @transform_1(%arg0: i32, %arg1: i32) -> (i32, i32) {
    %c1_i32 = arith.constant 1 : i32
    %0 = arith.muli %arg0, %c1_i32 : i32
    %1 = arith.addi %0, %arg1 : i32
    %c0_i32 = arith.constant 0 : i32
    %c0_i32_0 = arith.constant 0 : i32
    return %c0_i32, %1 : i32, i32
  }
  func.func @transform_2(%arg0: i32, %arg1: i32) -> (i32, i32, i32) {
    %c0_i32 = arith.constant 0 : i32
    %c0_i32_0 = arith.constant 0 : i32
    %c0_i32_1 = arith.constant 0 : i32
    return %arg0, %c0_i32, %c0_i32_0 : i32, i32, i32
  }
  func.func @transform_3(%arg0: i32, %arg1: i32) -> (i32, i32, i32) {
    %c0_i32 = arith.constant 0 : i32
    %c0_i32_0 = arith.constant 0 : i32
    %c0_i32_1 = arith.constant 0 : i32
    return %arg0, %c0_i32, %c0_i32_0 : i32, i32, i32
  }
  func.func @transform_4(%arg0: i32, %arg1: i32) -> (i32, i32, i32) {
    %c0_i32 = arith.constant 0 : i32
    %c0_i32_0 = arith.constant 0 : i32
    %c0_i32_1 = arith.constant 0 : i32
    return %arg0, %c0_i32, %c0_i32_0 : i32, i32, i32
  }
}

</mosaic_0001>

<bundles_post_ra>
// kernel: tpu_custom_call.1
= control target key start
LH: loop header
LB: loop body
LE: loop exit
PB: predicated region body
PF: predicated region fallthrough
CT: control target
= control target key end

     0   :  { %10 = vsyncpa [#allocation3], 0  ;;  %s324_s0 = inlined_call_operand.hbm [shape: f32[10,256], index: 0, kind: input, shape index: {}]   ;;  %s325_s1 = inlined_call_operand.hbm [shape: f32[10,256], index: 1, kind: input, shape index: {}]   ;;  %s326_s2 = inlined_call_operand.vmem [shape: f32[1,10,1], index: 2, kind: output, shape index: {0}]   ;;  %s327_s3 = inlined_call_operand.vmem [shape: f32[1,10,1], index: 3, kind: output, shape index: {1}]   ;;  %s328_s4 = inlined_call_operand.vmem [shape: f32[1,10,1], index: 4, kind: output, shape index: {2}]  }
   0x1   :  { %11 = vsyncpa [#allocation5], 0  ;;  %s198_s15 = smov [#allocation2]   ;;  %s150_s19 = scalar_lea.hbm %s324_s0, 512 }
   0x2   :  { %s21_s16 = sshll.u32 %s198_s15, 4  ;;  %p151_p0 = scmp.ne.s32.totalorder %s324_s0, %s150_s19  ;;  %s22_s16 = int_to_ptr.vmem [resolvable:$true] %s21_s16 }
   0x3   :  { %p154_p1 = scmp.lt.u32.totalorder %s150_s19, %s324_s0 }
   0x5   :  { %p156_p2 = pnand %p154_p1, %p151_p0 }
   0x7   :  { %159 = shalt.err (!%p156_p2)
}
   0x8   :  { %s160_s24 = scalar_lea.vmem %s22_s16, 512  ;;  %p165_p4 = scmp.lt.s32.totalorder %s22_s16, %s22_s16 }
   0x9   :  { %p161_p3 = scmp.ne.s32.totalorder %s22_s16, %s160_s24  ;;  %p166_p5 = scmp.lt.s32.totalorder %s160_s24, %s160_s24 }
   0xb   :  { %p167_p6 = por %p166_p5, %p165_p4 }
   0xd   :  { %p168_p7 = pnand %p167_p6, %p161_p3 }
   0xf   :  { %171 = shalt.err (!%p168_p7)
}
  0x10   :  { %s199_s25 = smov 256   ;;  %s200_s26 = smov 16  }
  0x11   :  { %27 = dma.hbm_to_vmem [thread:$0]  %s324_s0, 512, %s22_s16, [#allocation3], %s199_s25, %s199_s25, %s200_s26  }
  0x12   :  { %s201_s29 = smov [#allocation4]   ;;  %s172_s7 = scalar_lea.hbm %s325_s1, 512 }
  0x13   :  { %s37_s30 = sshll.u32 %s201_s29, 4  ;;  %p173_p8 = scmp.ne.s32.totalorder %s325_s1, %s172_s7  ;;  %s38_s30 = int_to_ptr.vmem [resolvable:$true] %s37_s30 }
  0x14   :  { %p176_p9 = scmp.lt.u32.totalorder %s172_s7, %s325_s1 }
  0x16   :  { %p178_p10 = pnand %p176_p9, %p173_p8 }
  0x18   :  { %181 = shalt.err (!%p178_p10)
}
  0x19   :  { %s182_s12 = scalar_lea.vmem %s38_s30, 512  ;;  %p187_p12 = scmp.lt.s32.totalorder %s38_s30, %s38_s30 }
  0x1a   :  { %p183_p11 = scmp.ne.s32.totalorder %s38_s30, %s182_s12  ;;  %p188_p13 = scmp.lt.s32.totalorder %s182_s12, %s182_s12 }
  0x1c   :  { %p189_p0 = por %p188_p13, %p187_p12 }
  0x1e   :  { %p190_p1 = pnand %p189_p0, %p183_p11 }
  0x20   :  { %193 = shalt.err (!%p190_p1)
}
  0x21   :  { %43 = dma.hbm_to_vmem [thread:$0]  %s325_s1, 512, %s38_s30, [#allocation5], %s199_s25, %s199_s25, %s200_s26  }
  0x22   :  { %194 = dma.done.wait [#allocation3], 512  }
  0x23   :  { %195 = vsyncadd [#allocation3], 4294966784 }
  0x24   :  { %196 = dma.done.wait [#allocation5], 512  }
  0x25   :  { %197 = vsyncadd [#allocation5], 4294966784  ;;  %vm58_vm0 = vcmask 7168   ;;  %v202_v0 = vmov 0.0   ;;  %v66_v1 = vld [vmem:[#allocation2] sm:$0xff]  ;;  %v67_v2 = vld [vmem:[#allocation2 + $0x8] sm:$0xff] }
  0x26   :  { %62 = vst.msk [vmem:[%s327_s3] sm:$0xff] %vm58_vm0, %v202_v0  ;;  %59 = vst.msk [vmem:[%s326_s2] sm:$0xff] %vm58_vm0, %v202_v0  ;;  %v70_v3 = vmax.f32 %v66_v1, 1e-05  ;;  %v71_v4 = vmax.f32 %v67_v2, 1e-05 }
  0x27   :  { %64 = vst.msk [vmem:[%s328_s4] sm:$0xff] %vm58_vm0, %v202_v0  ;;  %v78_v5 = vld [vmem:[#allocation4] sm:$0xff]  ;;  %v79_v6 = vld [vmem:[#allocation4 + $0x8] sm:$0xff]  ;;  %v68_v7 = vld [vmem:[#allocation2 + $0x10] sm:$0x3]  ;;  %vm91_vm1 = vcmask 1041408  }
  0x28   :  { %v69_v8 = vld [vmem:[#allocation2 + $0x18] sm:$0x3]  ;;  %v74_v9 = vmin.f32 %v70_v3, 0.99999  ;;  %v75_v10 = vmin.f32 %v71_v4, 0.99999  ;;  %v119_v32 = vadd.f32 %v79_v6, %v78_v5 }
  0x29   :  { %v72_v11 = vmax.f32 %v68_v7, 1e-05  ;;  %v73_v12 = vmax.f32 %v69_v8, 1e-05  ;;  %v80_v13 = vld [vmem:[#allocation4 + $0x10] sm:$0x3] }
  0x2a   :  { %v105_v14 = vadd.f32 %v75_v10, %v74_v9  ;;  %v84_v15 = vmul.f32 %v78_v5, %v74_v9  ;;  %v85_v16 = vmul.f32 %v79_v6, %v75_v10  ;;  %v81_v18 = vld [vmem:[#allocation4 + $0x18] sm:$0x3]  ;;  %v122_v25 = vsel %vm91_vm1, %v80_v13, 0.0 }
  0x2b   :  { %v76_v17 = vmin.f32 %v72_v11, 0.99999  ;;  %v77_v19 = vmin.f32 %v73_v12, 0.99999  ;;  %v123_v26 = vsel %vm91_vm1, %v81_v18, 0.0  ;;  %vm60_vm2 = vcmask 1024  }
  0x2c   :  { %106 = vadd.xlane.f32.xlu1 %v105_v14  ;;  %v88_v20 = vadd.f32 %v85_v16, %v84_v15  ;;  %v124_v31 = vadd.f32 %v123_v26, %v122_v25  ;;  %63 = vst.msk [vmem:[%s327_s3 + $0x8] sm:$0x3] %vm60_vm2, %v202_v0  ;;  %61 = vst.msk [vmem:[%s326_s2 + $0x8] sm:$0x3] %vm60_vm2, %v202_v0 }
  0x2d   :  { %v108_v21 = vsel %vm91_vm1, %v76_v17, 0.0  ;;  %v86_v22 = vmul.f32 %v80_v13, %v76_v17  ;;  %v109_v23 = vsel %vm91_vm1, %v77_v19, 0.0  ;;  %v87_v24 = vmul.f32 %v81_v18, %v77_v19  ;;  %65 = vst.msk [vmem:[%s328_s4 + $0x8] sm:$0x3] %vm60_vm2, %v202_v0  ;;  %v103_v33 = vld [vmem:[%s327_s3] sm:$0xff] }
  0x2e   :  { %89 = vadd.xlane.f32.xlu0 %v88_v20  ;;  %v110_v27 = vadd.f32 %v109_v23, %v108_v21  ;;  %v82_v35 = vld [vmem:[%s326_s2] sm:$0xff] }
  0x2f   :  { %v92_v28 = vsel %vm91_vm1, %v86_v22, 0.0  ;;  %v93_v29 = vsel %vm91_vm1, %v87_v24, 0.0  ;;  %v117_v47 = vld [vmem:[%s328_s4] sm:$0xff] }
  0x30   :  { %111 = vadd.xlane.f32.xlu1 %v110_v27  ;;  %v94_v30 = vadd.f32 %v93_v29, %v92_v28 }
  0x32   :  { %95 = vadd.xlane.f32.xlu0 %v94_v30 }
  0x33   :  { %v104_v38 = vld [vmem:[%s327_s3 + $0x8] sm:$0x3] }
  0x34   :  { %125 = vadd.xlane.f32.xlu1 %v124_v31  ;;  %v83_v41 = vld [vmem:[%s326_s2 + $0x8] sm:$0x3] }
  0x35   :  { %v118_v44 = vld [vmem:[%s328_s4 + $0x8] sm:$0x3] }
  0x36   :  { %120 = vadd.xlane.f32.xlu0 %v119_v32 }
  0xb9   :  { %v107_v34 = vpop.xlane.xlu1 %106 }
  0xba   :  { %v113_v36 = vadd.f32 %v107_v34, %v103_v33 }
  0xbb   :  { %v90_v37 = vpop.xlane.xlu0 %89 }
  0xbc   :  { %115 = vst.msk [vmem:[%s327_s3] sm:$0xff] %vm58_vm0, %v113_v36  ;;  %v97_v39 = vadd.f32 %v90_v37, %v82_v35 }
  0xbd   :  { %v112_v40 = vpop.xlane.xlu1 %111 }
  0xbe   :  { %100 = vst.msk [vmem:[%s326_s2] sm:$0xff] %vm58_vm0, %v97_v39  ;;  %v114_v42 = vadd.f32 %v112_v40, %v104_v38 }
  0xbf   :  { %v96_v43 = vpop.xlane.xlu0 %95 }
  0xc0   :  { %116 = vst.msk [vmem:[%s327_s3 + $0x8] sm:$0x3] %vm60_vm2, %v114_v42  ;;  %v98_v45 = vadd.f32 %v96_v43, %v83_v41 }
  0xc1   :  { %v126_v46 = vpop.xlane.xlu1 %125 }
  0xc2   :  { %102 = vst.msk [vmem:[%s326_s2 + $0x8] sm:$0x3] %vm60_vm2, %v98_v45  ;;  %v128_v48 = vadd.f32 %v126_v46, %v118_v44 }
  0xc3   :  { %v121_v49 = vpop.xlane.xlu0 %120 }
  0xc4   :  { %130 = vst.msk [vmem:[%s328_s4 + $0x8] sm:$0x3] %vm60_vm2, %v128_v48  ;;  %v127_v50 = vadd.f32 %v121_v49, %v117_v47 }
  0xc6   :  { %129 = vst.msk [vmem:[%s328_s4] sm:$0xff] %vm58_vm0, %v127_v50 }
  0xc7   :  { %143 = vsyncpa [#allocation3], 1 }
  0xc8   :  { %144 = vsyncpa [#allocation5], 1 }

</bundles_post_ra>
